<compile_context>
chip_gen: v7x
topology: tpu7x:2x2x1
jax: 0.10.0
libtpu: 0.0.40
codegen_flags: <defaults>
</compile_context>

<pallas_src>
import jax
import jax.numpy as jnp
from jax import lax
from jax.experimental import pallas as pl
from jax.experimental.pallas import tpu as pltpu


# ---------------------------------------------------------------------------
# Kernel
# ---------------------------------------------------------------------------
def _pool_kernel(nv_ref,                       # SMEM: (S,) valid pedestrian counts
                 pos_ref, hid_ref,             # (N_pad, 2) f32, (N_pad, H) compute dtype
                 wf_ref, w1b_ref, b1_ref,      # (2, 512) f32, (H, 512), (1, 512) f32
                 w2_ref, b2_ref,               # (512, B), (1, B) f32
                 out_ref):                     # (N_pad, B) f32
    n_pad, bdim = out_ref.shape
    d1 = w1b_ref.shape[1]
    nv = nv_ref[pl.program_id(0)]              # number of valid pedestrians this sequence

    # v[i] = pos[i] @ W_fold  -- K=2 contraction done as two VPU broadcast FMAs.
    pos = pos_ref[...].astype(jnp.float32)                       # (N_pad, 2)
    wf = wf_ref[...]                                             # (2, 512) f32
    pv = pos[:, 0:1] * wf[0:1, :] + pos[:, 1:2] * wf[1:2, :]     # (N_pad, 512) f32

    # u[j] = pos[j]@W_fold + hid[j]@W1b_fold + b1_fold  (O(N) matmul on the MXU)
    hu = jnp.dot(hid_ref[...], w1b_ref[...],
                 preferred_element_type=jnp.float32)             # (N_pad, 512) f32
    u = pv + hu + b1_ref[...]                                    # bias hoisted, one add

    # Layer 1 (BN + ReLU folded): z1[i*N+j] = relu(u[j] - v[i])
    z1 = jnp.maximum(u[None, :, :] - pv[:, None, :], 0.0)        # (N_pad, N_pad, 512)
    z1 = z1.reshape(n_pad * n_pad, d1)

    # Layer 2 (BN folded): z2 = relu(z1 @ W2_fold + b2_fold)  -- the only O(N^2) matmul
    z2 = jnp.dot(z1.astype(w2_ref.dtype), w2_ref[...],
                 preferred_element_type=jnp.float32) + b2_ref[...]
    z2 = jnp.maximum(z2, 0.0).reshape(n_pad, n_pad, bdim)

    # Pool: out[i] = max over valid j of z2[i, j, :]  (vectorized masked reduction,
    # single lane-dense store).
    j_ids = lax.broadcasted_iota(jnp.int32, (n_pad, n_pad, bdim), 1)
    masked = jnp.where(j_ids < nv, z2, jnp.float32(-1e30))
    out_ref[...] = jnp.max(masked, axis=1).astype(out_ref.dtype)


# ---------------------------------------------------------------------------
# Host-side wrapper: one pallas_call over all sequences
# ---------------------------------------------------------------------------
def pool_hidden_net_forward(kp, h_states, seq_start_end, end_pos):
    """h_states: (num_layers, batch, h_dim); seq_start_end: python list of (start, end);
    end_pos: (batch, 2). Returns (batch, bottleneck_dim) float32."""
    h_dim = kp["h_dim"]
    cdt = kp["compute_dtype"]
    h_flat = h_states.reshape(-1, h_dim)

    lengths = [int(e) - int(s) for (s, e) in seq_start_end]
    S = len(lengths)
    n_pad = max(8, ((max(lengths) + 7) // 8) * 8)     # pad to sublane multiple
    D1 = kp["w1b_fold"].shape[1]                      # 512
    B = kp["w2_fold"].shape[1]                        # bottleneck_dim

    # Pad each sequence's positions / hidden states to n_pad rows (zeros; masked later).
    pos_pad = jnp.zeros((S, n_pad, 2), jnp.float32)
    hid_pad = jnp.zeros((S, n_pad, h_dim), cdt)
    for si, (st, en) in enumerate(seq_start_end):
        st, en = int(st), int(en)
        pos_pad = pos_pad.at[si, :en - st].set(end_pos[st:en].astype(jnp.float32))
        hid_pad = hid_pad.at[si, :en - st].set(h_flat[st:en].astype(cdt))
    n_valid = jnp.array(lengths, dtype=jnp.int32)

    grid_spec = pltpu.PrefetchScalarGridSpec(
        num_scalar_prefetch=1,
        grid=(S,),
        in_specs=[
            # per-sequence tiles (leading dim squeezed -> kernel sees 2D refs)
            pl.BlockSpec((None, n_pad, 2), lambda s, nv: (s, 0, 0)),
            pl.BlockSpec((None, n_pad, h_dim), lambda s, nv: (s, 0, 0)),
            # weights: constant block index -> stay resident in VMEM across the grid
            pl.BlockSpec((2, D1), lambda s, nv: (0, 0)),
            pl.BlockSpec((h_dim, D1), lambda s, nv: (0, 0)),
            pl.BlockSpec((1, D1), lambda s, nv: (0, 0)),
            pl.BlockSpec((D1, B), lambda s, nv: (0, 0)),
            pl.BlockSpec((1, B), lambda s, nv: (0, 0)),
        ],
        out_specs=pl.BlockSpec((None, n_pad, B), lambda s, nv: (s, 0, 0)),
    )

    out = pl.pallas_call(
        _pool_kernel,
        grid_spec=grid_spec,
        out_shape=jax.ShapeDtypeStruct((S, n_pad, B), jnp.float32),
        compiler_params=pltpu.CompilerParams(
            dimension_semantics=("parallel",),        # shard sequences across v7x cores
            vmem_limit_bytes=32 * 1024 * 1024,        # explicit (v5e scoped default is 16 MiB)
        ),
    )(n_valid, pos_pad, hid_pad,
      kp["w_fold"], kp["w1b_fold"], kp["b1_fold"], kp["w2_fold"], kp["b2_fold"])

    pieces = [out[si, :lengths[si]] for si in range(S)]
    return jnp.concatenate(pieces, axis=0)


# ---------------------------------------------------------------------------
# Parameters: raw (PyTorch-style) + host-side folding into kernel weights
# ---------------------------------------------------------------------------
def init_raw_params(key, embedding_dim=32, h_dim=32, bottleneck_dim=128):
    mlp_pre_dim = embedding_dim + h_dim
    dims = [mlp_pre_dim, 512, bottleneck_dim]   # 512 hardcoded in the module
    ks = jax.random.split(key, 5)

    def linear(k, din, dout):
        kw, kb = jax.random.split(k)
        bound = 1.0 / jnp.sqrt(jnp.float32(din))
        w = jax.random.uniform(kw, (din, dout), jnp.float32, -bound, bound)
        b = jax.random.uniform(kb, (dout,), jnp.float32, -bound, bound)
        return w, b

    def batchnorm(k, d):
        k1, k2, k3 = jax.random.split(k, 3)
        gamma = 1.0 + 0.1 * jax.random.normal(k1, (d,), jnp.float32)
        beta = 0.1 * jax.random.normal(k2, (d,), jnp.float32)
        mean = 0.1 * jax.random.normal(k3, (d,), jnp.float32)
        var = jnp.ones((d,), jnp.float32)
        return gamma, beta, mean, var

    w_se, b_se = linear(ks[0], 2, embedding_dim)
    w1, b1 = linear(ks[1], dims[0], dims[1])
    w2, b2 = linear(ks[2], dims[1], dims[2])
    g1, be1, m1, v1 = batchnorm(ks[3], dims[1])
    g2, be2, m2, v2 = batchnorm(ks[4], dims[2])
    return dict(h_dim=h_dim, embedding_dim=embedding_dim,
                w_se=w_se, b_se=b_se, w1=w1, b1=b1, w2=w2, b2=b2,
                gamma1=g1, beta1=be1, mean1=m1, var1=v1,
                gamma2=g2, beta2=be2, mean2=m2, var2=v2)


def fold_params(raw, compute_dtype=jnp.float32, eps=1e-5):
    """Fold spatial_embedding + eval-mode BatchNorm into the mlp weights (exact)."""
    E = raw["embedding_dim"]
    s1 = raw["gamma1"] / jnp.sqrt(raw["var1"] + eps)
    t1 = raw["beta1"] - raw["mean1"] * s1
    s2 = raw["gamma2"] / jnp.sqrt(raw["var2"] + eps)
    t2 = raw["beta2"] - raw["mean2"] * s2
    w1a, w1b = raw["w1"][:E], raw["w1"][E:]

    w_fold = (raw["w_se"] @ w1a) * s1[None, :]                        # (2, 512)
    w1b_fold = (w1b * s1[None, :]).astype(compute_dtype)              # (H, 512)
    b1_fold = ((raw["b1"] + raw["b_se"] @ w1a) * s1 + t1)[None, :]    # (1, 512)
    w2_fold = (raw["w2"] * s2[None, :]).astype(compute_dtype)         # (512, B)
    b2_fold = (raw["b2"] * s2 + t2)[None, :]                          # (1, B)

    return dict(h_dim=raw["h_dim"], compute_dtype=compute_dtype,
                w_fold=w_fold.astype(jnp.float32),
                w1b_fold=w1b_fold,
                b1_fold=b1_fold.astype(jnp.float32),
                w2_fold=w2_fold,
                b2_fold=b2_fold.astype(jnp.float32))


# ---------------------------------------------------------------------------
# Pure-JAX mirror of the PyTorch forward (unfolded; for correctness checking)
# ---------------------------------------------------------------------------
def reference_forward(raw, h_states, seq_start_end, end_pos, eps=1e-5):
    h_flat = h_states.reshape(-1, raw["h_dim"])

    def bn(x, g, b, m, v):
        return (x - m) / jnp.sqrt(v + eps) * g + b

    outs = []
    for (start, end) in seq_start_end:
        start, end = int(start), int(end)
        N = end - start
        curr_hidden = h_flat[start:end]
        curr_end_pos = end_pos[start:end]
        hidden_1 = jnp.tile(curr_hidden, (N, 1))
        pos_1 = jnp.tile(curr_end_pos, (N, 1))
        pos_2 = jnp.repeat(curr_end_pos, N, axis=0)
        rel = pos_1 - pos_2
        emb = rel @ raw["w_se"] + raw["b_se"]
        x = jnp.concatenate([emb, hidden_1], axis=1)
        z1 = jnp.maximum(bn(x @ raw["w1"] + raw["b1"],
                            raw["gamma1"], raw["beta1"], raw["mean1"], raw["var1"]), 0.0)
        z2 = jnp.maximum(bn(z1 @ raw["w2"] + raw["b2"],
                            raw["gamma2"], raw["beta2"], raw["mean2"], raw["var2"]), 0.0)
        outs.append(z2.reshape(N, N, -1).max(axis=1))
    return jnp.concatenate(outs, axis=0)


# ---------------------------------------------------------------------------
if __name__ == "__main__":
    key = jax.random.PRNGKey(0)
    k_param, k_h, k_pos = jax.random.split(key, 3)

    embedding_dim, h_dim, bottleneck_dim = 32, 32, 128
    raw = init_raw_params(k_param, embedding_dim, h_dim, bottleneck_dim)

    num_layers, batch = 1, 8
    h_states = jax.random.normal(k_h, (num_layers, batch, h_dim), jnp.float32)
    end_pos = jax.random.normal(k_pos, (batch, 2), jnp.float32)
    seq_start_end = [(0, 3), (3, 8)]   # two sequences of different lengths (3 and 5)

    ref = reference_forward(raw, h_states, seq_start_end, end_pos)

    # f32 path: strict check of the folded/factorized kernel against the reference.
    kp32 = fold_params(raw, compute_dtype=jnp.float32)
    out32 = jax.block_until_ready(
        pool_hidden_net_forward(kp32, h_states, seq_start_end, end_pos))
    assert out32.shape == (batch, bottleneck_dim), out32.shape
    err32 = float(jnp.max(jnp.abs(out32 - ref)))
    assert jnp.allclose(out32, ref, atol=1e-3, rtol=1e-3), err32

    # bf16 MXU path (f32 accumulation): looser tolerance.
    kpbf = fold_params(raw, compute_dtype=jnp.bfloat16)
    outbf = jax.block_until_ready(
        pool_hidden_net_forward(kpbf, h_states, seq_start_end, end_pos))
    errbf = float(jnp.max(jnp.abs(outbf - ref)))
    assert jnp.allclose(outbf, ref, atol=5e-2, rtol=5e-2), errbf

    print("KERNEL_OK")
</pallas_src>

<mosaic_0001>
module attributes {stable_mosaic.version = 11 : i64} {
  func.func @_pool_kernel(%arg0: i32, %arg1: memref<2xi32, #tpu.memory_space<smem>>, %arg2: memref<1x8x2xf32, #tpu.memory_space<vmem>>, %arg3: memref<1x8x32xf32, #tpu.memory_space<vmem>>, %arg4: memref<2x512xf32, #tpu.memory_space<vmem>>, %arg5: memref<32x512xf32, #tpu.memory_space<vmem>>, %arg6: memref<1x512xf32, #tpu.memory_space<vmem>>, %arg7: memref<512x128xf32, #tpu.memory_space<vmem>>, %arg8: memref<1x128xf32, #tpu.memory_space<vmem>>, %arg9: memref<1x8x128xf32, #tpu.memory_space<vmem>>) attributes {dimension_semantics = [#tpu.dimension_semantics<parallel>], iteration_bounds = array<i64: 2>, scalar_prefetch = 1 : i64, scratch_operands = 0 : i64, tpu.core_type = #tpu.core_type<tc>, window_params = [{transform_indices = @transform_0, window_bounds = array<i64: 1, 8, 2>}, {transform_indices = @transform_1, window_bounds = array<i64: 1, 8, 32>}, {pipeline_mode = #tpu.pipeline_mode<synchronous>, transform_indices = @transform_2, window_bounds = array<i64: 2, 512>}, {pipeline_mode = #tpu.pipeline_mode<synchronous>, transform_indices = @transform_3, window_bounds = array<i64: 32, 512>}, {pipeline_mode = #tpu.pipeline_mode<synchronous>, transform_indices = @transform_4, window_bounds = array<i64: 1, 512>}, {pipeline_mode = #tpu.pipeline_mode<synchronous>, transform_indices = @transform_5, window_bounds = array<i64: 512, 128>}, {pipeline_mode = #tpu.pipeline_mode<synchronous>, transform_indices = @transform_6, window_bounds = array<i64: 1, 128>}, {transform_indices = @transform_7, window_bounds = array<i64: 1, 8, 128>}]} {
    %0 = arith.index_cast %arg0 : i32 to index
    %1 = memref.load %arg1[%0] : memref<2xi32, #tpu.memory_space<smem>>
    %c0 = arith.constant 0 : index
    %c0_0 = arith.constant 0 : index
    %c0_1 = arith.constant 0 : index
    %2 = vector.load %arg2[%c0, %c0_0, %c0_1] : memref<1x8x2xf32, #tpu.memory_space<vmem>>, vector<1x8x2xf32>
    %3 = vector.shape_cast %2 : vector<1x8x2xf32> to vector<8x2xf32>
    %c0_2 = arith.constant 0 : index
    %c0_3 = arith.constant 0 : index
    %4 = vector.load %arg4[%c0_2, %c0_3] : memref<2x512xf32, #tpu.memory_space<vmem>>, vector<2x512xf32>
    %5 = vector.extract_strided_slice %3 {offsets = [0, 0], sizes = [8, 1], strides = [1, 1]} : vector<8x2xf32> to vector<8x1xf32>
    %6 = vector.extract_strided_slice %4 {offsets = [0, 0], sizes = [1, 512], strides = [1, 1]} : vector<2x512xf32> to vector<1x512xf32>
    %7 = vector.broadcast %5 : vector<8x1xf32> to vector<8x512xf32>
    %8 = vector.broadcast %6 : vector<1x512xf32> to vector<8x512xf32>
    %9 = arith.mulf %7, %8 : vector<8x512xf32>
    %10 = vector.extract_strided_slice %3 {offsets = [0, 1], sizes = [8, 1], strides = [1, 1]} : vector<8x2xf32> to vector<8x1xf32>
    %11 = vector.extract_strided_slice %4 {offsets = [1, 0], sizes = [1, 512], strides = [1, 1]} : vector<2x512xf32> to vector<1x512xf32>
    %12 = vector.broadcast %10 : vector<8x1xf32> to vector<8x512xf32>
    %13 = vector.broadcast %11 : vector<1x512xf32> to vector<8x512xf32>
    %14 = arith.mulf %12, %13 : vector<8x512xf32>
    %15 = arith.addf %9, %14 : vector<8x512xf32>
    %c0_4 = arith.constant 0 : index
    %c0_5 = arith.constant 0 : index
    %c0_6 = arith.constant 0 : index
    %16 = vector.load %arg3[%c0_4, %c0_5, %c0_6] : memref<1x8x32xf32, #tpu.memory_space<vmem>>, vector<1x8x32xf32>
    %17 = vector.shape_cast %16 : vector<1x8x32xf32> to vector<8x32xf32>
    %c0_7 = arith.constant 0 : index
    %c0_8 = arith.constant 0 : index
    %18 = vector.load %arg5[%c0_7, %c0_8] : memref<32x512xf32, #tpu.memory_space<vmem>>, vector<32x512xf32>
    %cst = arith.constant dense<0.000000e+00> : vector<8x512xf32>
    %19 = tpu.matmul %17, %18, %cst {dimension_numbers = #tpu.dot_dimension_numbers<[1], [0], [0], [1], [0, 0, 1, 1], [], []>} : vector<8x32xf32>, vector<32x512xf32>, vector<8x512xf32> -> vector<8x512xf32>
    %20 = arith.addf %15, %19 : vector<8x512xf32>
    %c0_9 = arith.constant 0 : index
    %c0_10 = arith.constant 0 : index
    %21 = vector.load %arg6[%c0_9, %c0_10] : memref<1x512xf32, #tpu.memory_space<vmem>>, vector<1x512xf32>
    %22 = vector.broadcast %21 : vector<1x512xf32> to vector<8x512xf32>
    %23 = arith.addf %20, %22 : vector<8x512xf32>
    %24 = vector.shape_cast %23 : vector<8x512xf32> to vector<1x8x512xf32>
    %25 = vector.shape_cast %15 : vector<8x512xf32> to vector<8x1x512xf32>
    %26 = vector.broadcast %24 : vector<1x8x512xf32> to vector<8x8x512xf32>
    %27 = vector.broadcast %25 : vector<8x1x512xf32> to vector<8x8x512xf32>
    %28 = arith.subf %26, %27 : vector<8x8x512xf32>
    %cst_11 = arith.constant 0.000000e+00 : f32
    %29 = vector.broadcast %cst_11 : f32 to vector<8x8x512xf32>
    %30 = arith.maximumf %28, %29 : vector<8x8x512xf32>
    %31 = vector.shape_cast %30 : vector<8x8x512xf32> to vector<64x512xf32>
    %c0_12 = arith.constant 0 : index
    %c0_13 = arith.constant 0 : index
    %32 = vector.load %arg7[%c0_12, %c0_13] : memref<512x128xf32, #tpu.memory_space<vmem>>, vector<512x128xf32>
    %cst_14 = arith.constant dense<0.000000e+00> : vector<64x128xf32>
    %33 = tpu.matmul %31, %32, %cst_14 {dimension_numbers = #tpu.dot_dimension_numbers<[1], [0], [0], [1], [0, 0, 1, 1], [], []>} : vector<64x512xf32>, vector<512x128xf32>, vector<64x128xf32> -> vector<64x128xf32>
    %c0_15 = arith.constant 0 : index
    %c0_16 = arith.constant 0 : index
    %34 = vector.load %arg8[%c0_15, %c0_16] : memref<1x128xf32, #tpu.memory_space<vmem>>, vector<1x128xf32>
    %35 = vector.broadcast %34 : vector<1x128xf32> to vector<64x128xf32>
    %36 = arith.addf %33, %35 : vector<64x128xf32>
    %cst_17 = arith.constant 0.000000e+00 : f32
    %37 = vector.broadcast %cst_17 : f32 to vector<64x128xf32>
    %38 = arith.maximumf %36, %37 : vector<64x128xf32>
    %39 = vector.shape_cast %38 : vector<64x128xf32> to vector<8x8x128xf32>
    %40 = tpu.iota {dimensions = array<i32: 1>} : vector<8x8x128xi32>
    %41 = vector.broadcast %1 : i32 to vector<8x8x128xi32>
    %42 = arith.cmpi slt, %40, %41 : vector<8x8x128xi32>
    %cst_18 = arith.constant -1.000000e+30 : f32
    %43 = vector.broadcast %cst_18 : f32 to vector<8x8x128xf32>
    %44 = arith.select %42, %39, %43 : vector<8x8x128xi1>, vector<8x8x128xf32>
    %cst_19 = arith.constant dense<0xFF800000> : vector<8x128xf32>
    %45 = vector.multi_reduction <maximumf>, %44, %cst_19 [1] : vector<8x8x128xf32> to vector<8x128xf32>
    %c0_20 = arith.constant 0 : index
    %c0_21 = arith.constant 0 : index
    %c0_22 = arith.constant 0 : index
    %46 = vector.load %arg9[%c0_20, %c0_21, %c0_22] : memref<1x8x128xf32, #tpu.memory_space<vmem>>, vector<1x8x128xf32>
    %47 = vector.shape_cast %46 : vector<1x8x128xf32> to vector<8x128xf32>
    %48 = vector.shape_cast %45 : vector<8x128xf32> to vector<1x8x128xf32>
    tpu.vector_store %arg9[%c0_20, %c0_21, %c0_22], %48 {strides = array<i32>} : memref<1x8x128xf32, #tpu.memory_space<vmem>>, vector<1x8x128xf32>,
    return
  }
  func.func @transform_0(%arg0: i32, %arg1: memref<2xi32, #tpu.memory_space<smem>>) -> (i32, i32, i32) {
    %c0_i32 = arith.constant 0 : i32
    %c0_i32_0 = arith.constant 0 : i32
    %c0_i32_1 = arith.constant 0 : i32
    return %arg0, %c0_i32, %c0_i32_0 : i32, i32, i32
  }
  func.func @transform_1(%arg0: i32, %arg1: memref<2xi32, #tpu.memory_space<smem>>) -> (i32, i32, i32) {
    %c0_i32 = arith.constant 0 : i32
    %c0_i32_0 = arith.constant 0 : i32
    %c0_i32_1 = arith.constant 0 : i32
    return %arg0, %c0_i32, %c0_i32_0 : i32, i32, i32
  }
  func.func @transform_2(%arg0: i32, %arg1: memref<2xi32, #tpu.memory_space<smem>>) -> (i32, i32) {
    %c0_i32 = arith.constant 0 : i32
    %c0_i32_0 = arith.constant 0 : i32
    %c0_i32_1 = arith.constant 0 : i32
    return %c0_i32, %c0_i32_0 : i32, i32
  }
  func.func @transform_3(%arg0: i32, %arg1: memref<2xi32, #tpu.memory_space<smem>>) -> (i32, i32) {
    %c0_i32 = arith.constant 0 : i32
    %c0_i32_0 = arith.constant 0 : i32
    %c0_i32_1 = arith.constant 0 : i32
    return %c0_i32, %c0_i32_0 : i32, i32
  }
  func.func @transform_4(%arg0: i32, %arg1: memref<2xi32, #tpu.memory_space<smem>>) -> (i32, i32) {
    %c0_i32 = arith.constant 0 : i32
    %c0_i32_0 = arith.constant 0 : i32
    %c0_i32_1 = arith.constant 0 : i32
    return %c0_i32, %c0_i32_0 : i32, i32
  }
  func.func @transform_5(%arg0: i32, %arg1: memref<2xi32, #tpu.memory_space<smem>>) -> (i32, i32) {
    %c0_i32 = arith.constant 0 : i32
    %c0_i32_0 = arith.constant 0 : i32
    %c0_i32_1 = arith.constant 0 : i32
    return %c0_i32, %c0_i32_0 : i32, i32
  }
  func.func @transform_6(%arg0: i32, %arg1: memref<2xi32, #tpu.memory_space<smem>>) -> (i32, i32) {
    %c0_i32 = arith.constant 0 : i32
    %c0_i32_0 = arith.constant 0 : i32
    %c0_i32_1 = arith.constant 0 : i32
    return %c0_i32, %c0_i32_0 : i32, i32
  }
  func.func @transform_7(%arg0: i32, %arg1: memref<2xi32, #tpu.memory_space<smem>>) -> (i32, i32, i32) {
    %c0_i32 = arith.constant 0 : i32
    %c0_i32_0 = arith.constant 0 : i32
    %c0_i32_1 = arith.constant 0 : i32
    return %arg0, %c0_i32, %c0_i32_0 : i32, i32, i32
  }
}

</mosaic_0001>

<bundles_post_ra>
// kernel: tpu_custom_call.1
= control target key start
LH: loop header
LB: loop body
LE: loop exit
PB: predicated region body
PF: predicated region fallthrough
CT: control target
= control target key end

     0   :  { %s2219_s0 = inlined_call_operand.vmem [shape: s32[2], index: 0, kind: input, shape index: {}]   ;;  %s2220_s1 = inlined_call_operand.vmem [shape: f32[2,8,2], index: 1, kind: input, shape index: {}]   ;;  %s2221_s2 = inlined_call_operand.vmem [shape: f32[2,8,32], index: 2, kind: input, shape index: {}]   ;;  %s2222_s3 = inlined_call_operand.vmem [shape: f32[2,512], index: 3, kind: input, shape index: {}]   ;;  %s2223_s4 = inlined_call_operand.hbm [shape: f32[32,512], index: 4, kind: input, shape index: {}]   ;;  %s2224_s5 = inlined_call_operand.vmem [shape: f32[1,512], index: 5, kind: input, shape index: {}]   ;;  %s2225_s6 = inlined_call_operand.hbm [shape: f32[512,128], index: 6, kind: input, shape index: {}]   ;;  %s2226_s7 = inlined_call_operand.vmem [shape: f32[1,128], index: 7, kind: input, shape index: {}]   ;;  %s2227_s8 = inlined_call_operand.hbm [shape: f32[2,8,128], index: 8, kind: output, shape index: {}]  }
   0x1   :  { %s13_s29 = sshll.u32 %s2219_s0, 4  ;;  %s14_s29 = int_to_ptr.vmem [resolvable:$true] %s13_s29 }
   0x2   :  { %s1675_s30 = scalar_lea.vmem %s14_s29, 16  ;;  %p1680_p1 = scmp.lt.s32.totalorder %s14_s29, %s14_s29 }
   0x3   :  { %p1676_p0 = scmp.ne.s32.totalorder %s14_s29, %s1675_s30  ;;  %p1681_p2 = scmp.lt.s32.totalorder %s1675_s30, %s1675_s30 }
   0x5   :  { %p1682_p3 = por %p1681_p2, %p1680_p1 }
   0x7   :  { %p1683_p4 = pnand %p1682_p3, %p1676_p0 }
   0x9   :  { %1686 = shalt.err (!%p1683_p4)  }
   0xa   :  { %s1817_s9 = smov [#allocation3]  }
   0xb   :  { %16 = dma.vmem_to_smem %s14_s29, 16, %s1817_s9, [#allocation2] }
   0xc   :  { %1787 = dma.done.wait [#allocation2], 16 }
   0xd   :  { %1788 = vsyncadd [#allocation2], 4294967280 }
   0xe   :  { %18 = sfence }
   0xf   :  { %19 = vsyncpa [#allocation5], 0 }
  0x10   :  { %20 = vsyncpa [#allocation8], 0 }
  0x11   :  { %21 = vsyncpa [#allocation6], 0 }
  0x12   :  { %23 = vsyncpa [#allocation6 + $0x1], 0  ;;  %s1877_s10 = smov 0   ;;  %s1879_s0 = smov 0  }
  0x13   :  { %s1881_s11 = smov 0   ;;  %s1883_s12 = smov 0  }
  0x14 LB: > { %s1898_s13 = sadd.s32 4294967295, %s1815_s12   ;;  %s1394_s14 = sadd.s32 4294967294, %s1815_s12   ;;  %s1815_s12 = sphi %s1883_s12, %s2249_s12   ;;  %s1811_s11 = sphi %s1881_s11, %s2248_s11   ;;  %s1807_s0 = sphi %s1879_s0, %s2247_s0   ;;  %s1803_s10 = sphi %s1877_s10, %s2246_s10  }
  0x15   : > { %s1902_s15 = sadd.s32 1, %s1815_s12   ;;  %s193_s16 = sadd.s32 1, %s1811_s11 }
  0x16   : > { %s190_s17 = ssub.s32 %s1815_s12, %s1902_s15  ;;  %p203_p5 = scmp.ne.s32.totalorder %s1811_s11, %s1807_s0 }
  0x17   : > { %p191_p6 = scmp.eq.s32.totalorder %s190_s17, 0  ;;  %p204_p7 = scmp.eq.s32.totalorder %s1898_s13, 1 }
  0x18   : > { %p209_p8 = scmp.ne.s32.totalorder %s1807_s0, %s1803_s10  ;;  %p210_p9 = scmp.eq.s32.totalorder %s1394_s14, 1 }
  0x19   : > { %s1913_s18 = scalar_select %p191_p6, %s1811_s11, %s193_s16  }
  0x1a   : > { %p1915_p10 = por %p204_p7, %p203_p5  ;;  %p1919_p11 = por %p210_p9, %p209_p8 }
  0x1b   : > { %2231 = sst [smem:[#allocation14_spill]] %s1913_s18  ;;  %p1395_p12 = scmp.ge.s32.totalorder %s1815_s12, 1 }
  0x1c   : > { %s2232_s19 = scalar_select %p1915_p10, 1, 0 }
  0x1d   : > { %s2233_s20 = scalar_select %p1919_p11, 1, 0 }
  0x1e   : > { %p217_p13 = scmp.lt.s32.totalorder %s1815_s12, 3  ;;  %p2228_p0 = scmp.eq.s32.totalorder %s1898_s13, 0 }
  0x1f   : > { %s1818_s22 = smov [#allocation4]   ;;  %s1819_s25 = smov [#allocation7]  }
  0x20   : > { %p1926_p1 = pnand %p1395_p12, %p217_p13  ;;  %s232_s23 = sshll.u32 %s1818_s22, 4  ;;  %s233_s23 = int_to_ptr.vmem [resolvable:$true] %s232_s23 }
  0x21   : > { %s248_s26 = sshll.u32 %s1819_s25, 4  ;;  %s1687_s29 = scalar_lea.hbm %s2223_s4, 2048  ;;  %s1938_s26 = int_to_ptr.vmem [resolvable:$true] %s248_s26 }
  0x22   : > { %s2234_s21 = scalar_select %p1926_p1, 1, 0 }
  0x23   : > { %p1614_p2 = pneg %p1926_p1  ;;  %p1688_p4 = scmp.ne.s32.totalorder %s2223_s4, %s1687_s29 }
  0x24   : > { %p1694_p8 = scmp.lt.u32.totalorder %s1687_s29, %s2223_s4 }
  0x25   : > { %p1934_p3 = pnand %p2228_p0, %p1614_p2 }
  0x27   : > { %p1689_p5 = pneg %p1934_p3 }
  0x29   : > { %p1690_p6 = pnand %p1689_p5, %p1688_p4 }
  0x2b   : > { %p1691_p7 = pneg %p1690_p6 }
  0x2d   : > { %p1696_p9 = pnand %p1694_p8, %p1691_p7 }
  0x2f   : > { %1699 = shalt.err (!%p1696_p9)
}
  0x30   : > { %s1700_s17 = scalar_lea.vmem %s233_s23, 2048  ;;  %p1708_p0 = scmp.lt.s32.totalorder %s233_s23, %s233_s23 }
  0x31   : > { %p1701_p12 = scmp.ne.s32.totalorder %s233_s23, %s1700_s17  ;;  %p1709_p11 = scmp.lt.s32.totalorder %s1700_s17, %s1700_s17 }
  0x33   : > { %p1703_p13 = pnand %p1701_p12, %p1689_p5  ;;  %p1710_p10 = por %p1709_p11, %p1708_p0 }
  0x35   : > { %p1704_p2 = pneg %p1703_p13 }
  0x37   : > { %p1711_p1 = pnand %p1710_p10, %p1704_p2 }
  0x39   : > { %1714 = shalt.err (!%p1711_p1)
}
  0x3a   : > { %s1820_s22 = smov 512   ;;  %s1821_s25 = smov 32  }
  0x3b   : > { %1617 = dma.hbm_to_vmem [thread:$0]  (!%p1934_p3), %s2223_s4, 2048, %s233_s23, [#allocation5], %s1820_s22, %s1820_s22, %s1821_s25  }
  0x3c   : > { %s1715_s9 = scalar_lea.hbm %s2225_s6, 8192 }
  0x3d   : > { %p1716_p4 = scmp.ne.s32.totalorder %s2225_s6, %s1715_s9  ;;  %p1722_p0 = scmp.lt.u32.totalorder %s1715_s9, %s2225_s6 }
  0x3f   : > { %p1718_p10 = pnand %p1716_p4, %p1689_p5 }
  0x41   : > { %p1719_p11 = pneg %p1718_p10 }
  0x43   : > { %p1724_p1 = pnand %p1722_p0, %p1719_p11 }
  0x45   : > { %1727 = shalt.err (!%p1724_p1)
}
  0x46   : > { %s1728_s23 = scalar_lea.vmem %s1938_s26, 8192  ;;  %p1736_p9 = scmp.lt.s32.totalorder %s1938_s26, %s1938_s26 }
  0x47   : > { %p1729_p6 = scmp.ne.s32.totalorder %s1938_s26, %s1728_s23  ;;  %p1737_p12 = scmp.lt.s32.totalorder %s1728_s23, %s1728_s23 }
  0x49   : > { %p1731_p7 = pnand %p1729_p6, %p1689_p5  ;;  %p1738_p13 = por %p1737_p12, %p1736_p9 }
  0x4b   : > { %p1732_p8 = pneg %p1731_p7 }
  0x4d   : > { %p1739_p2 = pnand %p1738_p13, %p1732_p8 }
  0x4f   : > { %1742 = shalt.err (!%p1739_p2)
}
  0x50   : > { %s1822_s18 = smov 128   ;;  %s1823_s22 = smov 8  }
  0x51   : > { %1620 = dma.hbm_to_vmem [thread:$0]  (!%p1934_p3), %s2225_s6, 8192, %s1938_s26, [#allocation8], %s1822_s18, %s1822_s18, %s1823_s22  }
  0x52   : > { %p2236_p4 = scmp.ne.s32.totalorder %s2234_s21, 0 }
  0x53   : > { %p2237_p5 = scmp.eq.s32.totalorder (!%p2236_p4), %s1898_s13, 0 }
  0x54   : > { %281 = sbr.rel (%p2236_p4) target bundleno = 606 (0x25e), region = 48 }
  0x5b   : > { %1790 = dma.done.wait (%p2237_p5), [#allocation5], 2048   ;;  %p2238_p10 = pmov %p2237_p5 }
  0x5c   : > { %p2239_p11 = pmov %p2237_p5 }
  0x5d   : > { %1792 = vsyncadd (%p2238_p10), [#allocation5], 4294965248 }
  0x5e   : > { %1794 = dma.done.wait (%p2239_p11), [#allocation8], 8192   ;;  %p2240_p0 = pmov %p2237_p5 }
  0x5f   : > { %p320_p1 = scmp.lt.s32.totalorder %s1898_s13, 1  ;;  %v1824_v0 = vmov 0.0   ;;  %v1825_v1 = vmov 0   ;;  %v427_v2 = vld [vmem:[#allocation4 + $0x8] sm:$0xff]  ;;  %v429_v4 = vld [vmem:[#allocation4 + $0x18] sm:$0xff]  ;;  %v426_v7 = vld [vmem:[#allocation4] sm:$0xff] }
  0x60   : > { %1796 = vsyncadd (%p2240_p0), [#allocation8], 4294959104  ;;  %510 = vmatprep.mubr.f32.mxu0 %v1824_v0  ;;  %581 = vmatprep.mubr.f32.mxu1 %v1824_v0  ;;  %v431_v3 = vld [vmem:[#allocation4 + $0x28] sm:$0xff]  ;;  %v433_v6 = vld [vmem:[#allocation4 + $0x38] sm:$0xff]  ;;  %vm442_vm0 = vcmask 261120   ;;  %v1826_v47 = vmov 1  }
  0x61   : > { %1673 = vset.pattern.permute.xlu0 %v1825_v1  ;;  %s1999_s21 = scalar_select %p320_p1, %s1898_s13, 1  ;;  %v1524_v5 = vpack.c.bf16 %v431_v3, %v427_v2  ;;  %v430_v8 = vld [vmem:[#allocation4 + $0x20] sm:$0xff]  ;;  %v1532_v9 = vpack.c.bf16 %v433_v6, %v429_v4  ;;  %v428_v11 = vld [vmem:[#allocation4 + $0x10] sm:$0xff]  ;;  %v435_v13 = vld [vmem:[#allocation4 + $0x48] sm:$0xff]  ;;  %vm1271_vm2 = vcmask 1041409   ;;  %vm1273_vm3 = vcmask 1042434  }
  0x62   : > { %v1526_v10 = vpack.c.bf16 %v430_v8, %v426_v7  ;;  %v432_v12 = vld [vmem:[#allocation4 + $0x30] sm:$0xff]  ;;  %v439_v15 = vld [vmem:[#allocation4 + $0x68] sm:$0xff]  ;;  %v437_v16 = vld [vmem:[#allocation4 + $0x58] sm:$0xff]  ;;  %s328_s22 = sld [smem:[#allocation3 + %s1898_s13]]  ;;  %vm1275_vm4 = vcmask 1043459   ;;  %vm1277_vm5 = vcmask 1044484  }
  0x63   : > { %s1403_s24 = sshll.u32 %s1999_s21, 3  ;;  %1525 = vmatprep.subr.bf16.mxu0 %v1524_v5  ;;  %v1534_v14 = vpack.c.bf16 %v432_v12, %v428_v11  ;;  %v441_v17 = vld [vmem:[#allocation4 + $0x78] sm:$0xff]  ;;  %1533 = vmatprep.subr.bf16.mxu1 %v1532_v9  ;;  %v1528_v18 = vpack.c.bf16 %v439_v15, %v435_v13  ;;  %v434_v20 = vld [vmem:[#allocation4 + $0x40] sm:$0xff]  ;;  %v436_v22 = vld [vmem:[#allocation4 + $0x50] sm:$0xff]  ;;  %s317_s21 = sand.u32 1, %s1807_s0   ;;  %vm1279_vm6 = vcmask 1045509  }
  0x64   : > { %s323_s29 = scalar_lea.vmem %s2220_s1, %s1403_s24  ;;  %1527 = vmatpush1.bf16.msra.mxu0 %v1526_v10  ;;  %v1536_v19 = vpack.c.bf16 %v441_v17, %v437_v16  ;;  %v438_v21 = vld [vmem:[#allocation4 + $0x60] sm:$0xff]  ;;  %v440_v24 = vld [vmem:[#allocation4 + $0x70] sm:$0xff]  ;;  %s327_s14 = scalar_lea.vmem %s2221_s2, %s1403_s24  ;;  %v931_v28 = vld [vmem:[#allocation7 + $0x88] sm:$0xff]  ;;  %vm1281_vm7 = vcmask 1046534   ;;  %vm1283_vm8 = vcmask 1047559  }
  0x65   : > { %1535 = vmatpush1.bf16.msra.mxu1 %v1534_v14  ;;  %v1530_v23 = vpack.c.bf16 %v438_v21, %v434_v20  ;;  %v329_v25 = vld [vmem:[%s323_s29] sm:$0xff]  ;;  %1529 = vmatprep.subr.bf16.mxu0 %v1528_v18  ;;  %v1538_v26 = vpack.c.bf16 %v440_v24, %v436_v22  ;;  %v963_v31 = vld [vmem:[#allocation7 + $0x188] sm:$0xff]  ;;  %v932_v40 = vld [vmem:[#allocation7 + $0x90] sm:$0xff]  ;;  %s1402_s24 = sshll.u32 %s317_s21, 3  ;;  %s1409_s26 = sshll.u32 %s1898_s13, 7 }
  0x66   : > { %1537 = vmatprep.subr.bf16.mxu1 %v1536_v19  ;;  %v930_v27 = vld [vmem:[#allocation7 + $0x80] sm:$0xff]  ;;  %333 = vperm.xlu0 %1673, %v329_v25   ;;  %v915_v33 = vld [vmem:[#allocation7 + $0x8] sm:$0xff]  ;;  %v933_v41 = vld [vmem:[#allocation7 + $0x98] sm:$0xff]  ;;  %s319_s28 = scalar_lea.vmem [#allocation9], %s1402_s24  ;;  %s1288_s16 = scalar_lea.sflag [#allocation6], %s317_s21 }
  0x67   : > { %v962_v29 = vld [vmem:[#allocation7 + $0x180] sm:$0xff]  ;;  %v1540_v30 = vpack.c.bf16 %v931_v28, %v930_v27  ;;  %v947_v37 = vld [vmem:[#allocation7 + $0x108] sm:$0xff]  ;;  %v964_v42 = vld [vmem:[#allocation7 + $0x190] sm:$0xff]  ;;  %v1544_v43 = vpack.c.bf16 %v933_v41, %v932_v40  ;;  %s1301_s29 = sshll.u32 %s319_s28, 4  ;;  %p2243_p6 = scmp.ne.s32.totalorder %s2232_s19, 0  ;;  %s2179_s29 = int_to_ptr.vmem [resolvable:$true] %s1301_s29 }
  0x68   : > { %v914_v32 = vld [vmem:[#allocation7] sm:$0xff]  ;;  %1531 = vmatpush1.bf16.msra.mxu0 %v1530_v23  ;;  %v1572_v35 = vpack.c.bf16 %v963_v31, %v962_v29  ;;  %v965_v44 = vld [vmem:[#allocation7 + $0x198] sm:$0xff]  ;;  %v916_v45 = vld [vmem:[#allocation7 + $0x10] sm:$0xff]  ;;  %s1743_s17 = scalar_lea.vmem %s2179_s29, 128  ;;  %s1828_s13 = smov [#allocation9]  }
  0x69   : > { %v425_v34 = vld [vmem:[%s327_s14] sm:$0xff]  ;;  %1539 = vmatpush1.bf16.msra.mxu1 %v1538_v26  ;;  %1541 = vmatprep.subr.bf16.mxu0 %v1540_v30  ;;  %v1542_v38 = vpack.c.bf16 %v915_v33, %v914_v32  ;;  %v917_v46 = vld [vmem:[#allocation7 + $0x18] sm:$0xff]  ;;  %v1576_v48 = vpack.c.bf16 %v965_v44, %v964_v42  ;;  %v948_v49 = vld [vmem:[#allocation7 + $0x110] sm:$0xff]  ;;  %s2177_s14 = scalar_lea.hbm %s2227_s8, %s1409_s26  ;;  %p1744_p3 = scmp.ne.s32.totalorder %s2179_s29, %s1743_s17 }
  0x6a   : > { %v946_v36 = vld [vmem:[#allocation7 + $0x100] sm:$0xff]  ;;  %1573 = vmatprep.subr.bf16.mxu1 %v1572_v35  ;;  %1674 = vset.pattern.permute.xlu0 %v1826_v47  ;;  %v949_v50 = vld [vmem:[#allocation7 + $0x118] sm:$0xff]  ;;  %v935_v52 = vld [vmem:[#allocation7 + $0xa8] sm:$0xff]  ;;  %v1546_v54 = vpack.c.bf16 %v917_v46, %v916_v45  ;;  %s1747_s23 = sshll.u32 %s1828_s13, 4  ;;  %s1748_s23 = int_to_ptr.vmem [resolvable:$false] %s1747_s23 }
  0x6b   : > { %v1574_v39 = vpack.c.bf16 %v947_v37, %v946_v36  ;;  %1405 = vmatmul.mubr.msk.f32.vlgmr.msra.gmra.mrb[0].mxu0 %vm442_vm0, %v425_v34  ;;  %378 = vperm.xlu0 %1674, %v329_v25   ;;  %v934_v51 = vld [vmem:[#allocation7 + $0xa0] sm:$0xff]  ;;  %v1578_v55 = vpack.c.bf16 %v949_v50, %v948_v49  ;;  %v967_v56 = vld [vmem:[#allocation7 + $0x1a8] sm:$0xff]  ;;  %v936_v62 = vld [vmem:[#allocation7 + $0xb0] sm:$0xff]  ;;  %p1745_p7 = pnand %p1744_p3, %p2243_p6  ;;  %s1749_s18 = scalar_lea.vmem %s1748_s23, 256 }
  0x6c   : > { %1406 = vmatmul.mubr.msk.f32.vlgmr.msra.gmra.mrb[0].mxu1 %vm442_vm0, %v425_v34  ;;  %v966_v53 = vld [vmem:[#allocation7 + $0x1a0] sm:$0xff]  ;;  %1543 = vmatpush3.bf16.msra.mxu0 %v1542_v38  ;;  %v919_v58 = vld [vmem:[#allocation7 + $0x28] sm:$0xff]  ;;  %v1548_v59 = vpack.c.bf16 %v935_v52, %v934_v51  ;;  %v937_v0 = vld [vmem:[#allocation7 + $0xb8] sm:$0xff]  ;;  %p1750_p9 = scmp.lt.s32.totalorder %s2179_s29, %s1748_s23  ;;  %p1751_p12 = scmp.lt.s32.totalorder %s1749_s18, %s1743_s17 }
  0x6d   : > { %1575 = vmatpush3.bf16.msra.mxu1 %v1574_v39  ;;  %v918_v57 = vld [vmem:[#allocation7 + $0x20] sm:$0xff]  ;;  %1545 = vmatprep.subr.bf16.mxu0 %v1544_v43  ;;  %v951_v61 = vld [vmem:[#allocation7 + $0x128] sm:$0xff]  ;;  %v1580_v63 = vpack.c.bf16 %v967_v56, %v966_v53  ;;  %v968_v1 = vld [vmem:[#allocation7 + $0x1b0] sm:$0xff]  ;;  %v1552_v7 = vpack.c.bf16 %v937_v0, %v936_v62  ;;  %p1746_p8 = pneg %p1745_p7 }
  0x6e   : > { %1577 = vmatprep.subr.bf16.mxu1 %v1576_v48  ;;  %v950_v60 = vld [vmem:[#allocation7 + $0x120] sm:$0xff]  ;;  %v969_v2 = vld [vmem:[#allocation7 + $0x1b8] sm:$0xff]  ;;  %v1550_v3 = vpack.c.bf16 %v919_v58, %v918_v57  ;;  %v920_v5 = vld [vmem:[#allocation7 + $0x30] sm:$0xff]  ;;  %p1752_p13 = por %p1751_p12, %p1750_p9 }
  0x6f   : > { %v1582_v4 = vpack.c.bf16 %v951_v61, %v950_v60  ;;  %v921_v6 = vld [vmem:[#allocation7 + $0x38] sm:$0xff]  ;;  %v1584_v8 = vpack.c.bf16 %v969_v2, %v968_v1  ;;  %v952_v9 = vld [vmem:[#allocation7 + $0x130] sm:$0xff]  ;;  %v938_v11 = vld [vmem:[#allocation7 + $0xc0] sm:$0xff]  ;;  %v337_v61 = vlaneseq }
  0x70   : > { %1547 = vmatpush3.bf16.msra.mxu0 %v1546_v54  ;;  %v953_v10 = vld [vmem:[#allocation7 + $0x138] sm:$0xff]  ;;  %v939_v12 = vld [vmem:[#allocation7 + $0xc8] sm:$0xff]  ;;  %v970_v13 = vld [vmem:[#allocation7 + $0x1c0] sm:$0xff]  ;;  %v1554_v15 = vpack.c.bf16 %v921_v6, %v920_v5  ;;  %p1753_p2 = pnand %p1752_p13, %p1746_p8 }
  0x71   : > { %1579 = vmatpush3.bf16.msra.mxu1 %v1578_v55  ;;  %1549 = vmatprep.subr.bf16.mxu0 %v1548_v59  ;;  %v971_v14 = vld [vmem:[#allocation7 + $0x1c8] sm:$0xff]  ;;  %v1586_v16 = vpack.c.bf16 %v953_v10, %v952_v9  ;;  %v922_v17 = vld [vmem:[#allocation7 + $0x40] sm:$0xff]  ;;  %v1556_v19 = vpack.c.bf16 %v939_v12, %v938_v11  ;;  %v940_v23 = vld [vmem:[#allocation7 + $0xd0] sm:$0xff]  ;;  %v2010_v62 = vshrl.u32 %v337_v61, 7 }
  0x72   : > { %1581 = vmatprep.subr.bf16.mxu1 %v1580_v63  ;;  %v923_v18 = vld [vmem:[#allocation7 + $0x48] sm:$0xff]  ;;  %v1588_v20 = vpack.c.bf16 %v971_v14, %v970_v13  ;;  %v954_v21 = vld [vmem:[#allocation7 + $0x140] sm:$0xff]  ;;  %v941_v24 = vld [vmem:[#allocation7 + $0xd8] sm:$0xff] }
  0x73   : > { %v955_v22 = vld [vmem:[#allocation7 + $0x148] sm:$0xff]  ;;  %v972_v25 = vld [vmem:[#allocation7 + $0x1d0] sm:$0xff]  ;;  %v973_v26 = vld [vmem:[#allocation7 + $0x1d8] sm:$0xff]  ;;  %v1558_v27 = vpack.c.bf16 %v923_v18, %v922_v17  ;;  %v1560_v29 = vpack.c.bf16 %v941_v24, %v940_v23  ;;  %v2013_v63 = vsub.s32 0, %v2010_v62  ;;  %v2019_v1 = vsub.s32 2, %v2010_v62 }
  0x74   : > { %1551 = vmatpush3.bf16.msra.mxu0 %v1550_v3  ;;  %v1590_v28 = vpack.c.bf16 %v955_v22, %v954_v21  ;;  %v1592_v30 = vpack.c.bf16 %v973_v26, %v972_v25  ;;  %v924_v31 = vld [vmem:[#allocation7 + $0x50] sm:$0xff]  ;;  %v925_v32 = vld [vmem:[#allocation7 + $0x58] sm:$0xff]  ;;  %v942_v37 = vld [vmem:[#allocation7 + $0xe0] sm:$0xff]  ;;  %v347_v2 = vsub.s32 4, %v2010_v62  ;;  %v351_v3 = vsub.s32 6, %v2010_v62 }
  0x75   : > { %1583 = vmatpush3.bf16.msra.mxu1 %v1582_v4  ;;  %1553 = vmatprep.subr.bf16.mxu0 %v1552_v7  ;;  %v956_v33 = vld [vmem:[#allocation7 + $0x150] sm:$0xff]  ;;  %v1562_v34 = vpack.c.bf16 %v925_v32, %v924_v31  ;;  %v957_v35 = vld [vmem:[#allocation7 + $0x158] sm:$0xff]  ;;  %v943_v38 = vld [vmem:[#allocation7 + $0xe8] sm:$0xff]  ;;  %v2024_v4 = vsub.s32 1, %v2010_v62  ;;  %v2027_v5 = vsub.s32 3, %v2010_v62  ;;  %v391_v6 = vsub.s32 5, %v2010_v62 }
  0x76   : > { %1585 = vmatprep.subr.bf16.mxu1 %v1584_v8  ;;  %v1594_v36 = vpack.c.bf16 %v957_v35, %v956_v33  ;;  %v1564_v39 = vpack.c.bf16 %v943_v38, %v942_v37  ;;  %v974_v40 = vld [vmem:[#allocation7 + $0x1e0] sm:$0xff]  ;;  %v975_v41 = vld [vmem:[#allocation7 + $0x1e8] sm:$0xff]  ;;  %v944_v49 = vld [vmem:[#allocation7 + $0xf0] sm:$0xff]  ;;  %v395_v7 = vsub.s32 7, %v2010_v62  ;;  %v1827_v26 = vmov 1966171168  }
  0x77   : > { %v926_v42 = vld [vmem:[#allocation7 + $0x60] sm:$0xff]  ;;  %v1596_v43 = vpack.c.bf16 %v975_v41, %v974_v40  ;;  %v927_v44 = vld [vmem:[#allocation7 + $0x68] sm:$0xff]  ;;  %v945_v50 = vld [vmem:[#allocation7 + $0xf8] sm:$0xff] }
  0x78   : > { %1555 = vmatpush3.bf16.msra.mxu0 %v1554_v15  ;;  %v958_v45 = vld [vmem:[#allocation7 + $0x160] sm:$0xff]  ;;  %v959_v46 = vld [vmem:[#allocation7 + $0x168] sm:$0xff]  ;;  %v1566_v47 = vpack.c.bf16 %v927_v44, %v926_v42  ;;  %v976_v51 = vld [vmem:[#allocation7 + $0x1f0] sm:$0xff]  ;;  %v1568_v52 = vpack.c.bf16 %v945_v50, %v944_v49 }
  0x79   : > { %1587 = vmatpush3.bf16.msra.mxu1 %v1586_v16  ;;  %1557 = vmatprep.subr.bf16.mxu0 %v1556_v19  ;;  %v1598_v48 = vpack.c.bf16 %v959_v46, %v958_v45  ;;  %v977_v53 = vld [vmem:[#allocation7 + $0x1f8] sm:$0xff]  ;;  %v928_v54 = vld [vmem:[#allocation7 + $0x70] sm:$0xff]  ;;  %v330_v0 = vld [vmem:[%s2222_s3] sm:$0xff] }
  0x7a   : > { %1589 = vmatprep.subr.bf16.mxu1 %v1588_v20  ;;  %v929_v55 = vld [vmem:[#allocation7 + $0x78] sm:$0xff]  ;;  %v1600_v56 = vpack.c.bf16 %v977_v53, %v976_v51  ;;  %v960_v58 = vld [vmem:[#allocation7 + $0x170] sm:$0xff]  ;;  %v340_v8 = vrot.slane %v330_v0, %v2013_v63  ;;  %v344_v9 = vrot.slane %v330_v0, %v2019_v1  ;;  %v348_v10 = vrot.slane %v330_v0, %v347_v2 }
  0x7b   : > { %v1570_v57 = vpack.c.bf16 %v929_v55, %v928_v54  ;;  %v961_v59 = vld [vmem:[#allocation7 + $0x178] sm:$0xff]  ;;  %v352_v11 = vrot.slane %v330_v0, %v351_v3  ;;  %v384_v13 = vrot.slane %v330_v0, %v2024_v4  ;;  %v388_v14 = vrot.slane %v330_v0, %v2027_v5 }
  0x7c   : > { %1559 = vmatpush3.bf16.msra.mxu0 %v1558_v27  ;;  %v1602_v60 = vpack.c.bf16 %v961_v59, %v960_v58  ;;  %v392_v15 = vrot.slane %v330_v0, %v391_v6  ;;  %v396_v16 = vrot.slane %v330_v0, %v395_v7  ;;  %v360_v17 = vrot.slane %v340_v8, %v2013_v63 }
  0x7d   : > { %1591 = vmatpush3.bf16.msra.mxu1 %v1590_v28  ;;  %1561 = vmatprep.subr.bf16.mxu0 %v1560_v29  ;;  %v364_v18 = vrot.slane %v344_v9, %v2013_v63  ;;  %v368_v19 = vrot.slane %v348_v10, %v2013_v63  ;;  %v372_v20 = vrot.slane %v352_v11, %v2013_v63  ;;  %v627_v27 = vunpack.c.l.s4 %v1827_v26 }
  0x7e   : > { %1593 = vmatprep.subr.bf16.mxu1 %v1592_v30  ;;  %v404_v21 = vrot.slane %v384_v13, %v2024_v4  ;;  %v408_v22 = vrot.slane %v388_v14, %v2024_v4  ;;  %v412_v23 = vrot.slane %v392_v15, %v2024_v4  ;;  %v416_v24 = vrot.slane %v396_v16, %v2024_v4 }
  0x80   : > { %1563 = vmatpush3.bf16.msra.mxu0 %v1562_v34 }
  0x81   : > { %1595 = vmatpush3.bf16.msra.mxu1 %v1594_v36  ;;  %1565 = vmatprep.subr.bf16.mxu0 %v1564_v39  ;;  %v628_v36 = vunpack.c.0.s8 %v627_v27 }
  0x82   : > { %1597 = vmatprep.subr.bf16.mxu1 %v1596_v43 }
  0x83   : > { %v2044_v42 = vsub.s32 %v628_v36, %v2010_v62 }
  0x84   : > { %1567 = vmatpush3.bf16.msra.mxu0 %v1566_v47  ;;  %v592_v47 = vld [vmem:[%s2224_s5] sm:$0xf] }
  0x85   : > { %1599 = vmatpush3.bf16.msra.mxu1 %v1598_v48  ;;  %1569 = vmatprep.subr.bf16.mxu0 %v1568_v52  ;;  %v597_v52 = vrot.slane %v592_v47, %v2013_v63  ;;  %v605_v54 = vrot.slane %v592_v47, %v2019_v1  ;;  %v601_v55 = vrot.slane %v592_v47, %v2024_v4 }
  0x86   : > { %1601 = vmatprep.subr.bf16.mxu1 %v1600_v56  ;;  %v609_v61 = vrot.slane %v592_v47, %v2027_v5 }
  0x88   : > { %1571 = vmatpush3.bf16.msra.mxu0 %v1570_v57 }
  0x89   : > { %1603 = vmatpush3.bf16.msra.mxu1 %v1602_v60 }
  0xe5   : > { %v334_v12 = vpop.permute.xlu0 %333 }
  0xe6   : > { %v373_v28 = vmul.f32 %v360_v17, %v334_v12  ;;  %v374_v29 = vmul.f32 %v364_v18, %v334_v12  ;;  %v375_v30 = vmul.f32 %v368_v19, %v334_v12  ;;  %v376_v31 = vmul.f32 %v372_v20, %v334_v12 }
  0xea   : > { %v379_v25 = vpop.permute.xlu0 %378 }
  0xeb   : > { %v417_v32 = vmul.f32 %v404_v21, %v379_v25  ;;  %v418_v33 = vmul.f32 %v408_v22, %v379_v25  ;;  %v419_v34 = vmul.f32 %v412_v23, %v379_v25  ;;  %v420_v35 = vmul.f32 %v416_v24, %v379_v25 }
  0xed   : > { %v421_v37 = vadd.f32 %v417_v32, %v373_v28  ;;  %v423_v38 = vadd.f32 %v419_v34, %v375_v30  ;;  %v422_v39 = vadd.f32 %v418_v33, %v374_v29  ;;  %v424_v40 = vadd.f32 %v420_v35, %v376_v31 }
  0xef   : > { %v622_v41 = vcombine.low %v421_v37, %v422_v39  ;;  %v624_v43 = vcombine.low %v423_v38, %v424_v40  ;;  %v623_v49 = vcombine.high %v421_v37, %v422_v39  ;;  %v625_v50 = vcombine.high %v423_v38, %v424_v40 }
  0xf1   : > { %v632_v44 = vrot.slane %v622_v41, %v2044_v42  ;;  %v646_v45 = vrot.slane %v624_v43, %v2044_v42  ;;  %v2057_v60 = vrot.slane %v623_v49, %v2044_v42  ;;  %v653_v6 = vrot.slane %v625_v50, %v2044_v42 }
  0xf3   : > { %v654_v46 = vcombine.low %v632_v44, %v646_v45  ;;  %v655_v48 = vcombine.high %v632_v44, %v646_v45  ;;  %v656_v23 = vcombine.low %v2057_v60, %v653_v6 }
  0xf5   : > { %v664_v51 = vrot.slane %v654_v46, %v2044_v42  ;;  %v678_v56 = vrot.slane %v655_v48, %v2044_v42  ;;  %v671_v44 = vrot.slane %v656_v23, %v2044_v42 }
  0xf7   : > { %v697_v7 = vrot.slane %v664_v51, %v2024_v4  ;;  %v693_v10 = vrot.slane %v664_v51, %v2013_v63  ;;  %v701_v11 = vrot.slane %v664_v51, %v2019_v1  ;;  %v713_v14 = vrot.slane %v678_v56, %v2024_v4 }
  0xf8   : > { %v686_v15 = vcombine.high %v664_v51, %v664_v51  ;;  %v705_v17 = vrot.slane %v664_v51, %v2027_v5  ;;  %v721_v19 = vrot.slane %v678_v56, %v2027_v5  ;;  %v709_v26 = vrot.slane %v678_v56, %v2013_v63 }
  0xf9   : > { %v717_v28 = vrot.slane %v678_v56, %v2019_v1  ;;  %v688_v30 = vcombine.high %v678_v56, %v678_v56 }
  0xfa   : > { %v729_v29 = vrot.slane %v686_v15, %v2024_v4  ;;  %v737_v34 = vrot.slane %v686_v15, %v2027_v5  ;;  %v725_v43 = vrot.slane %v686_v15, %v2013_v63  ;;  %v733_v45 = vrot.slane %v686_v15, %v2019_v1 }
  0xfb   : > { %v745_v46 = vrot.slane %v688_v30, %v2024_v4  ;;  %v753_v49 = vrot.slane %v688_v30, %v2027_v5  ;;  %v741_v56 = vrot.slane %v688_v30, %v2013_v63  ;;  %v687_v15 = vcombine.high %v671_v44, %v671_v44 }
 0x13e   : > { %v512_v53 = vpop.f32.mrb[0].mxu0 }
 0x13f   : > { %v588_v57 = vadd.f32 %v512_v53, %v421_v37  ;;  %v583_v58 = vpop.f32.mrb[0].mxu1  ;;  %v514_v59 = vpop.f32.mrb[1].mxu0 }
 0x140   : > { %v590_v0 = vadd.f32 %v583_v58, %v423_v38  ;;  %v589_v2 = vadd.f32 %v514_v59, %v422_v39  ;;  %v585_v3 = vpop.f32.mrb[1].mxu1  ;;  %v657_v39 = vcombine.high %v2057_v60, %v653_v6  ;;  %v749_v58 = vrot.slane %v688_v30, %v2019_v1 }
 0x141   : > { %v2062_v8 = vadd.f32 %v597_v52, %v588_v57  ;;  %v591_v9 = vadd.f32 %v585_v3, %v424_v40  ;;  %v761_v59 = vrot.slane %v671_v44, %v2024_v4 }
 0x142   : > { %v2066_v12 = vadd.f32 %v605_v54, %v590_v0  ;;  %v2068_v13 = vadd.f32 %v601_v55, %v589_v2  ;;  %v685_v57 = vrot.slane %v657_v39, %v2044_v42  ;;  %v769_v0 = vrot.slane %v671_v44, %v2027_v5 }
 0x143   : > { %v2071_v16 = vadd.f32 %v609_v61, %v591_v9  ;;  %v850_v18 = vsub.f32 %v2062_v8, %v693_v10  ;;  %v854_v33 = vsub.f32 %v2062_v8, %v709_v26  ;;  %v858_v48 = vsub.f32 %v2062_v8, %v725_v43 }
 0x144   : > { %v851_v20 = vsub.f32 %v2068_v13, %v697_v7  ;;  %v852_v21 = vsub.f32 %v2066_v12, %v701_v11  ;;  %v855_v22 = vsub.f32 %v2068_v13, %v713_v14  ;;  %v856_v37 = vsub.f32 %v2066_v12, %v717_v28 }
 0x145   : > { %v853_v24 = vsub.f32 %v2071_v16, %v705_v17  ;;  %v857_v25 = vsub.f32 %v2071_v16, %v721_v19  ;;  %v882_v32 = vmax.f32 %v850_v18, 0.0  ;;  %v859_v38 = vsub.f32 %v2068_v13, %v729_v29 }
 0x146   : > { %v883_v27 = vmax.f32 %v851_v20, 0.0  ;;  %v884_v35 = vmax.f32 %v852_v21, 0.0  ;;  %v887_v36 = vmax.f32 %v855_v22, 0.0  ;;  %v861_v41 = vsub.f32 %v2071_v16, %v737_v34 }
 0x147   : > { %v885_v31 = vmax.f32 %v853_v24, 0.0  ;;  %v889_v40 = vmax.f32 %v857_v25, 0.0  ;;  %v886_v47 = vmax.f32 %v854_v33, 0.0  ;;  %v888_v50 = vmax.f32 %v856_v37, 0.0 }
 0x148   : > { %1049 = vmatprep.mubr.f32.mxu0 %v883_v27  ;;  %v891_v51 = vmax.f32 %v859_v38, 0.0  ;;  %v860_v52 = vsub.f32 %v2066_v12, %v733_v45  ;;  %v863_v53 = vsub.f32 %v2068_v13, %v745_v46  ;;  %v893_v54 = vmax.f32 %v861_v41, 0.0 }
 0x149   : > { %1154 = vmatprep.mubr.f32.mxu1 %v885_v31  ;;  %1050 = vmatmul.mubr.f32.vlgmr.msra.gmra.mrb[2].mxu0 %v882_v32  ;;  %v865_v55 = vsub.f32 %v2071_v16, %v753_v49  ;;  %v890_v60 = vmax.f32 %v858_v48, 0.0  ;;  %v862_v61 = vsub.f32 %v2062_v8, %v741_v56  ;;  %v864_v6 = vsub.f32 %v2066_v12, %v749_v58 }
 0x14a   : > { %1155 = vmatmul.mubr.f32.vlgmr.msra.gmra.mrb[2].mxu1 %v884_v35  ;;  %1054 = vmatprep.mubr.f32.mxu0 %v887_v36  ;;  %v892_v2 = vmax.f32 %v860_v52, 0.0  ;;  %v895_v3 = vmax.f32 %v863_v53, 0.0  ;;  %v867_v7 = vsub.f32 %v2068_v13, %v761_v59  ;;  %v869_v9 = vsub.f32 %v2071_v16, %v769_v0 }
 0x14b   : > { %1159 = vmatprep.mubr.f32.mxu1 %v889_v40  ;;  %v897_v42 = vmax.f32 %v865_v55, 0.0  ;;  %v757_v10 = vrot.slane %v671_v44, %v2013_v63  ;;  %v765_v11 = vrot.slane %v671_v44, %v2019_v1  ;;  %v777_v14 = vrot.slane %v685_v57, %v2024_v4 }
 0x14c   : > { %v894_v17 = vmax.f32 %v862_v61, 0.0  ;;  %v785_v19 = vrot.slane %v685_v57, %v2027_v5  ;;  %v896_v20 = vmax.f32 %v864_v6, 0.0  ;;  %v899_v21 = vmax.f32 %v867_v7, 0.0 }
 0x14d   : > { %1055 = vmatmul.mubr.f32.gmra.mrb[4].mxu0 %v886_v47  ;;  %v866_v18 = vsub.f32 %v2062_v8, %v757_v10  ;;  %v868_v22 = vsub.f32 %v2066_v12, %v765_v11  ;;  %v871_v23 = vsub.f32 %v2068_v13, %v777_v14  ;;  %v901_v24 = vmax.f32 %v869_v9, 0.0 }
 0x14e   : > { %1160 = vmatmul.mubr.f32.gmra.mrb[4].mxu1 %v888_v50  ;;  %1059 = vmatprep.mubr.f32.mxu0 %v891_v51  ;;  %v873_v25 = vsub.f32 %v2071_v16, %v785_v19  ;;  %v773_v26 = vrot.slane %v685_v57, %v2013_v63  ;;  %v781_v27 = vrot.slane %v685_v57, %v2019_v1  ;;  %v1205_v0 = vstv %s328_s22 }
 0x14f   : > { %1164 = vmatprep.mubr.f32.mxu1 %v893_v54  ;;  %v793_v28 = vrot.slane %v687_v15, %v2024_v4  ;;  %v689_v29 = vcombine.high %v685_v57, %v685_v57  ;;  %v898_v30 = vmax.f32 %v866_v18, 0.0  ;;  %v801_v32 = vrot.slane %v687_v15, %v2027_v5 }
 0x150   : > { %v870_v31 = vsub.f32 %v2062_v8, %v773_v26  ;;  %v900_v33 = vmax.f32 %v868_v22, 0.0  ;;  %v903_v34 = vmax.f32 %v871_v23, 0.0  ;;  %v872_v35 = vsub.f32 %v2066_v12, %v781_v27 }
 0x151   : > { %1060 = vmatmul.mubr.f32.gmra.mrb[6].mxu0 %v890_v60  ;;  %v875_v36 = vsub.f32 %v2068_v13, %v793_v28  ;;  %v905_v37 = vmax.f32 %v873_v25, 0.0  ;;  %v877_v38 = vsub.f32 %v2071_v16, %v801_v32  ;;  %v789_v39 = vrot.slane %v687_v15, %v2013_v63 }
 0x152   : > { %1165 = vmatmul.mubr.f32.gmra.mrb[6].mxu1 %v892_v2  ;;  %1064 = vmatprep.mubr.f32.mxu0 %v895_v3  ;;  %v797_v40 = vrot.slane %v687_v15, %v2019_v1  ;;  %v809_v41 = vrot.slane %v689_v29, %v2024_v4  ;;  %v902_v43 = vmax.f32 %v870_v31, 0.0  ;;  %v817_v45 = vrot.slane %v689_v29, %v2027_v5 }
 0x153   : > { %1169 = vmatprep.mubr.f32.mxu1 %v897_v42  ;;  %v874_v44 = vsub.f32 %v2062_v8, %v789_v39  ;;  %v904_v46 = vmax.f32 %v872_v35, 0.0  ;;  %v907_v47 = vmax.f32 %v875_v36, 0.0  ;;  %v909_v50 = vmax.f32 %v877_v38, 0.0 }
 0x154   : > { %v876_v48 = vsub.f32 %v2066_v12, %v797_v40  ;;  %v879_v49 = vsub.f32 %v2068_v13, %v809_v41  ;;  %v881_v51 = vsub.f32 %v2071_v16, %v817_v45  ;;  %v805_v52 = vrot.slane %v689_v29, %v2013_v63 }
 0x155   : > { %1065 = vmatmul.mubr.f32.gmra.mrb[8].mxu0 %v894_v17  ;;  %v813_v4 = vrot.slane %v689_v29, %v2019_v1  ;;  %v906_v53 = vmax.f32 %v874_v44, 0.0  ;;  %vm2145_vm1 = vcmp.lt.s32.totalorder %v2010_v62, %v1205_v0 }
 0x156   : > { %1170 = vmatmul.mubr.f32.gmra.mrb[8].mxu1 %v896_v20  ;;  %1069 = vmatprep.mubr.f32.mxu0 %v899_v21  ;;  %v878_v5 = vsub.f32 %v2062_v8, %v805_v52  ;;  %v908_v54 = vmax.f32 %v876_v48, 0.0  ;;  %v911_v55 = vmax.f32 %v879_v49, 0.0  ;;  %v913_v13 = vmax.f32 %v881_v51, 0.0  ;;  %v2141_v8 = vld [vmem:[%s2226_s7] ss:$0 sm:$0xff] }
 0x157   : > { %1174 = vmatprep.mubr.f32.mxu1 %v901_v24  ;;  %v880_v56 = vsub.f32 %v2066_v12, %v813_v4 }
 0x158   : > { %v910_v16 = vmax.f32 %v878_v5, 0.0 }
 0x159   : > { %1070 = vmatmul.mubr.f32.gmra.mrb[10].mxu0 %v898_v30  ;;  %v912_v63 = vmax.f32 %v880_v56, 0.0 }
 0x15a   : > { %1175 = vmatmul.mubr.f32.gmra.mrb[10].mxu1 %v900_v33  ;;  %1074 = vmatprep.mubr.f32.mxu0 %v903_v34 }
 0x15b   : > { %1179 = vmatprep.mubr.f32.mxu1 %v905_v37 }
 0x15d   : > { %1075 = vmatmul.mubr.f32.gmra.mrb[12].mxu0 %v902_v43 }
 0x15e   : > { %1180 = vmatmul.mubr.f32.gmra.mrb[12].mxu1 %v904_v46  ;;  %1079 = vmatprep.mubr.f32.mxu0 %v907_v47 }
 0x15f   : > { %1184 = vmatprep.mubr.f32.mxu1 %v909_v50 }
 0x161   : > { %1080 = vmatmul.mubr.f32.gmra.mrb[14].mxu0 %v906_v53 }
 0x162   : > { %1185 = vmatmul.mubr.f32.gmra.mrb[14].mxu1 %v908_v54  ;;  %1084 = vmatprep.mubr.f32.mxu0 %v911_v55 }
 0x163   : > { %1189 = vmatprep.mubr.f32.mxu1 %v913_v13 }
 0x165   : > { %1085 = vmatmul.mubr.f32.gmra.mrb[16].mxu0 %v910_v16 }
 0x166   : > { %1190 = vmatmul.mubr.f32.gmra.mrb[16].mxu1 %v912_v63 }
 0x21c   : > { %v1444_v1 = vpop.f32.mrb[2].mxu0 }
 0x21d   : > { %v1500_v57 = vpop.f32.mrb[2].mxu1  ;;  %v1445_v58 = vpop.f32.mrb[3].mxu0 }
 0x21e   : > { %v1446_v59 = vadd.f32 %v1445_v58, %v1444_v1  ;;  %v1501_v12 = vpop.f32.mrb[3].mxu1 }
 0x21f   : > { %v1502_v60 = vadd.f32 %v1501_v12, %v1500_v57 }
 0x220   : > { %v1052_v61 = vadd.f32 %v1446_v59, %v2141_v8  ;;  %v1447_v2 = vpop.f32.mrb[4].mxu0 }
 0x221   : > { %v1503_v3 = vpop.f32.mrb[4].mxu1  ;;  %v1448_v6 = vpop.f32.mrb[5].mxu0 }
 0x222   : > { %v1157_v7 = vadd.f32 %v1502_v60, %v1052_v61  ;;  %v1449_v42 = vadd.f32 %v1448_v6, %v1447_v2  ;;  %v1504_v9 = vpop.f32.mrb[5].mxu1 }
 0x223   : > { %v1505_v11 = vadd.f32 %v1504_v9, %v1503_v3 }
 0x224   : > { %v1195_v14 = vmax.f32 %v1157_v7, 0.0  ;;  %v1057_v15 = vadd.f32 %v1449_v42, %v2141_v8  ;;  %v1450_v17 = vpop.f32.mrb[6].mxu0 }
 0x225   : > { %v1506_v18 = vpop.f32.mrb[6].mxu1  ;;  %v1451_v19 = vpop.f32.mrb[7].mxu0 }
 0x226   : > { %v1207_v20 = vsel %vm2145_vm1, %v1195_v14, -1e+30  ;;  %v1162_v21 = vadd.f32 %v1505_v11, %v1057_v15  ;;  %v1452_v22 = vadd.f32 %v1451_v19, %v1450_v17  ;;  %v1507_v23 = vpop.f32.mrb[7].mxu1 }
 0x227   : > { %v1215_v24 = vrot.slane %v1207_v20, 4  ;;  %v1508_v25 = vadd.f32 %v1507_v23, %v1506_v18 }
 0x228   : > { %v1196_v26 = vmax.f32 %v1162_v21, 0.0  ;;  %v1062_v62 = vadd.f32 %v1452_v22, %v2141_v8  ;;  %v1453_v27 = vpop.f32.mrb[8].mxu0 }
 0x229   : > { %v1216_v28 = vmax.f32 %v1207_v20, %v1215_v24  ;;  %v1509_v29 = vpop.f32.mrb[8].mxu1  ;;  %v1454_v30 = vpop.f32.mrb[9].mxu0 }
 0x22a   : > { %v1208_v31 = vsel %vm2145_vm1, %v1196_v26, -1e+30  ;;  %v1167_v32 = vadd.f32 %v1508_v25, %v1062_v62  ;;  %v1455_v33 = vadd.f32 %v1454_v30, %v1453_v27  ;;  %v1510_v34 = vpop.f32.mrb[9].mxu1 }
 0x22b   : > { %v1217_v35 = vrot.slane %v1216_v28, 2  ;;  %v1221_v36 = vrot.slane %v1208_v31, 4  ;;  %v1511_v37 = vadd.f32 %v1510_v34, %v1509_v29 }
 0x22c   : > { %v1197_v38 = vmax.f32 %v1167_v32, 0.0  ;;  %v1067_v39 = vadd.f32 %v1455_v33, %v2141_v8  ;;  %v1456_v40 = vpop.f32.mrb[10].mxu0 }
 0x22d   : > { %v1218_v41 = vmax.f32 %v1216_v28, %v1217_v35  ;;  %v1222_v43 = vmax.f32 %v1208_v31, %v1221_v36  ;;  %v1512_v44 = vpop.f32.mrb[10].mxu1  ;;  %v1457_v45 = vpop.f32.mrb[11].mxu0 }
 0x22e   : > { %v1209_v46 = vsel %vm2145_vm1, %v1197_v38, -1e+30  ;;  %v1172_v47 = vadd.f32 %v1511_v37, %v1067_v39  ;;  %v1458_v48 = vadd.f32 %v1457_v45, %v1456_v40  ;;  %v1513_v49 = vpop.f32.mrb[11].mxu1 }
 0x22f   : > { %v1223_v50 = vrot.slane %v1222_v43, 2  ;;  %v1227_v51 = vrot.slane %v1209_v46, 4  ;;  %v1514_v52 = vadd.f32 %v1513_v49, %v1512_v44  ;;  %v1219_v54 = vrot.slane %v1218_v41, 1 }
 0x230   : > { %v1198_v4 = vmax.f32 %v1172_v47, 0.0  ;;  %v1072_v53 = vadd.f32 %v1458_v48, %v2141_v8  ;;  %v1459_v5 = vpop.f32.mrb[12].mxu0 }
 0x231   : > { %v1224_v55 = vmax.f32 %v1222_v43, %v1223_v50  ;;  %v1228_v56 = vmax.f32 %v1209_v46, %v1227_v51  ;;  %v1515_v13 = vpop.f32.mrb[12].mxu1  ;;  %v1460_v16 = vpop.f32.mrb[13].mxu0  ;;  %v1220_v6 = vmax.f32 %v1218_v41, %v1219_v54 }
 0x232   : > { %v1210_v63 = vsel %vm2145_vm1, %v1198_v4, -1e+30  ;;  %v1177_v1 = vadd.f32 %v1514_v52, %v1072_v53  ;;  %v1461_v57 = vadd.f32 %v1460_v16, %v1459_v5  ;;  %v1516_v58 = vpop.f32.mrb[13].mxu1 }
 0x233   : > { %v1225_v59 = vrot.slane %v1224_v55, 1  ;;  %v1229_v12 = vrot.slane %v1228_v56, 2  ;;  %v1233_v60 = vrot.slane %v1210_v63, 4  ;;  %v1517_v61 = vadd.f32 %v1516_v58, %v1515_v13 }
 0x234   : > { %v1199_v0 = vmax.f32 %v1177_v1, 0.0  ;;  %v1077_v2 = vadd.f32 %v1461_v57, %v2141_v8  ;;  %v1462_v3 = vpop.f32.mrb[14].mxu0 }
 0x235   : > { %v1226_v7 = vmax.f32 %v1224_v55, %v1225_v59  ;;  %v1230_v42 = vmax.f32 %v1228_v56, %v1229_v12  ;;  %v1234_v9 = vmax.f32 %v1210_v63, %v1233_v60  ;;  %v1518_v11 = vpop.f32.mrb[14].mxu1  ;;  %v1463_v14 = vpop.f32.mrb[15].mxu0 }
 0x236   : > { %v1211_v15 = vsel %vm2145_vm1, %v1199_v0, -1e+30  ;;  %v1182_v17 = vadd.f32 %v1517_v61, %v1077_v2  ;;  %v1464_v18 = vadd.f32 %v1463_v14, %v1462_v3  ;;  %v1519_v19 = vpop.f32.mrb[15].mxu1 }
 0x237   : > { %v1272_v20 = vsel %vm1271_vm2, %v1226_v7, %v1220_v6  ;;  %v1231_v21 = vrot.slane %v1230_v42, 1  ;;  %v1235_v22 = vrot.slane %v1234_v9, 2  ;;  %v1239_v23 = vrot.slane %v1211_v15, 4 }
 0x238   : > { %v1200_v24 = vmax.f32 %v1182_v17, 0.0  ;;  %v1082_v25 = vadd.f32 %v1464_v18, %v2141_v8  ;;  %v1520_v26 = vadd.f32 %v1519_v19, %v1518_v11  ;;  %v1465_v62 = vpop.f32.mrb[16].mxu0 }
 0x239   : > { %v1232_v27 = vmax.f32 %v1230_v42, %v1231_v21  ;;  %v1236_v28 = vmax.f32 %v1234_v9, %v1235_v22  ;;  %v1240_v29 = vmax.f32 %v1211_v15, %v1239_v23  ;;  %v1521_v30 = vpop.f32.mrb[16].mxu1  ;;  %v1466_v31 = vpop.f32.mrb[17].mxu0 }
 0x23a   : > { %v1212_v32 = vsel %vm2145_vm1, %v1200_v24, -1e+30  ;;  %v1187_v33 = vadd.f32 %v1520_v26, %v1082_v25  ;;  %v1467_v34 = vadd.f32 %v1466_v31, %v1465_v62  ;;  %v1522_v35 = vpop.f32.mrb[17].mxu1 }
 0x23b   : > { %v1274_v36 = vsel %vm1273_vm3, %v1232_v27, %v1272_v20  ;;  %v1237_v37 = vrot.slane %v1236_v28, 1  ;;  %v1241_v38 = vrot.slane %v1240_v29, 2  ;;  %v1245_v39 = vrot.slane %v1212_v32, 4 }
 0x23c   : > { %v1201_v40 = vmax.f32 %v1187_v33, 0.0  ;;  %v1087_v41 = vadd.f32 %v1467_v34, %v2141_v8  ;;  %v1523_v43 = vadd.f32 %v1522_v35, %v1521_v30 }
 0x23d   : > { %v1238_v44 = vmax.f32 %v1236_v28, %v1237_v37  ;;  %v1242_v45 = vmax.f32 %v1240_v29, %v1241_v38  ;;  %v1246_v46 = vmax.f32 %v1212_v32, %v1245_v39 }
 0x23e   : > { %v1213_v47 = vsel %vm2145_vm1, %v1201_v40, -1e+30  ;;  %v1192_v48 = vadd.f32 %v1523_v43, %v1087_v41 }
 0x23f   : > { %v1276_v49 = vsel %vm1275_vm4, %v1238_v44, %v1274_v36  ;;  %v1243_v50 = vrot.slane %v1242_v45, 1  ;;  %v1247_v51 = vrot.slane %v1246_v46, 2  ;;  %v1251_v52 = vrot.slane %v1213_v47, 4 }
 0x240   : > { %v1202_v4 = vmax.f32 %v1192_v48, 0.0 }
 0x241   : > { %v1244_v53 = vmax.f32 %v1242_v45, %v1243_v50  ;;  %v1248_v5 = vmax.f32 %v1246_v46, %v1247_v51  ;;  %v1252_v54 = vmax.f32 %v1213_v47, %v1251_v52 }
 0x242   : > { %v1214_v8 = vsel %vm2145_vm1, %v1202_v4, -1e+30 }
 0x243   : > { %v1278_v55 = vsel %vm1277_vm5, %v1244_v53, %v1276_v49  ;;  %v1249_v56 = vrot.slane %v1248_v5, 1  ;;  %v1253_v13 = vrot.slane %v1252_v54, 2  ;;  %v1257_v16 = vrot.slane %v1214_v8, 4 }
 0x245   : > { %v1250_v63 = vmax.f32 %v1248_v5, %v1249_v56  ;;  %v1254_v1 = vmax.f32 %v1252_v54, %v1253_v13  ;;  %v1258_v57 = vmax.f32 %v1214_v8, %v1257_v16 }
 0x247   : > { %v1255_v58 = vrot.slane %v1254_v1, 1  ;;  %v1259_v59 = vrot.slane %v1258_v57, 2  ;;  %v1280_v12 = vsel %vm1279_vm6, %v1250_v63, %v1278_v55 }
 0x249   : > { %v1256_v60 = vmax.f32 %v1254_v1, %v1255_v58  ;;  %v1260_v61 = vmax.f32 %v1258_v57, %v1259_v59 }
 0x24b   : > { %v1261_v10 = vrot.slane %v1260_v61, 1  ;;  %v1282_v0 = vsel %vm1281_vm7, %v1256_v60, %v1280_v12 }
 0x24d   : > { %v1262_v2 = vmax.f32 %v1260_v61, %v1261_v10 }
 0x24f   : > { %v1284_v3 = vsel %vm1283_vm8, %v1262_v2, %v1282_v0 }
 0x250   : > { %1286 = vst [vmem:[%s319_s28] sm:$0xff] %v1284_v3 }
 0x251   : > { %1756 = shalt.err (!%p1753_p2)
}
 0x252   : > { %s1757_s22 = scalar_lea.hbm %s2177_s14, 128  ;;  %s1761_s21 = scalar_lea.hbm %s2227_s8, 256 }
 0x253   : > { %p1758_p4 = scmp.ne.s32.totalorder %s2177_s14, %s1757_s22  ;;  %p1762_p11 = scmp.lt.u32.totalorder %s2177_s14, %s2227_s8 }
 0x254   : > { %p1763_p0 = scmp.lt.u32.totalorder %s1761_s21, %s1757_s22  ;;  %p1765_p3 = scmp.lt.u32.totalorder %s1757_s22, %s2177_s14 }
 0x255   : > { %p1759_p5 = pnand %p1758_p4, %p2243_p6 }
 0x256   : > { %p1764_p1 = por %p1763_p0, %p1762_p11 }
 0x257   : > { %p1760_p10 = pneg %p1759_p5 }
 0x258   : > { %p1766_p7 = por %p1765_p3, %p1764_p1 }
 0x25a   : > { %p1767_p8 = pnand %p1766_p7, %p1760_p10 }
 0x25c   : > { %1770 = shalt.err (!%p1767_p8)
}
 0x25d   : > { %1612 = dma.vmem_to_hbm [thread:$0]  (%p2243_p6), %s2179_s29, 128, %s2177_s14, %s1288_s16  }
 0x25e PF: > { %p1629_p9 = scmp.ge.s32.totalorder %s1815_s12, 2  ;;  %s1313_s28 = sand.u32 1, %s1803_s10  }
 0x25f   : > { %p2244_p12 = scmp.ne.s32.totalorder %s2233_s20, 0  ;;  %s1314_s30 = scalar_lea.sflag [#allocation6], %s1313_s28 }
 0x261   : > { %p1622_p13 = pnand %p1629_p9, %p2244_p12 }
 0x263   : > { %1798 = dma.done.wait (!%p1622_p13), %s1314_s30, 128  }
 0x264   : > { %1800 = vsyncadd (!%p1622_p13), %s1314_s30, 4294967168  ;;  %s2245_s9 = sld [smem:[#allocation14_spill]]  ;;  %p26_p2 = scmp.ge.s32.totalorder %s1902_s15, 4  }
 0x265   : > { %s2246_s10 = smov %s1807_s0  ;;  %s2247_s0 = smov %s1811_s11 }
 0x266   : > { %s2249_s12 = smov %s1902_s15  ;;  %28 = sbr.rel (!%p26_p2) target bundleno = 20 (0x14), region = 95 }
 0x26a   : > { %s2248_s11 = smov %s2245_s9 }
 0x26d   :  { %1319 = vsyncpa [#allocation5], 1 }
 0x26e   :  { %1321 = vsyncpa [#allocation5 + $0x1], 1 }
 0x26f   :  { %1322 = vsyncpa [#allocation8], 1 }
 0x270   :  { %1323 = vsyncpa [#allocation6], 1 }
 0x271   :  { %1325 = vsyncpa [#allocation6 + $0x1], 1 }

</bundles_post_ra>
